<compile_context>
chip_gen: v7x
topology: tpu7x:2x2x1
jax: 0.10.0
libtpu: 0.0.40
codegen_flags: <defaults>
</compile_context>

<pallas_src>
import math

import jax
import jax.numpy as jnp
from jax.experimental import pallas as pl
from jax.experimental.pallas import tpu as pltpu


_HALF_LOG_2PI = 0.5 * math.log(2.0 * math.pi)
_LOG_2 = math.log(2.0)
_VMEM_BUDGET = 48 * 1024 * 1024   # stay well under v7x's 64 MiB physical VMEM


def _round_up(n, m):
    return ((n + m - 1) // m) * m


def _softplus(x):
    # numerically stable softplus
    return jnp.maximum(x, 0.0) + jnp.log1p(jnp.exp(-jnp.abs(x)))


def _make_policy_kernel(num_hidden_layers, action_dim, with_logprob):
    """Kernel body for a fixed MLP depth.  Refs:
       (x, eps, w_in, b_in, [w_hid, b_hid,] w_out, b_out, out)."""

    def kernel(*refs):
        x_ref, eps_ref = refs[0], refs[1]
        idx = 2
        w_in_ref, b_in_ref = refs[idx], refs[idx + 1]
        idx += 2
        if num_hidden_layers > 0:
            w_hid_ref, b_hid_ref = refs[idx], refs[idx + 1]
            idx += 2
        w_out_ref, b_out_ref = refs[idx], refs[idx + 1]
        out_ref = refs[idx + 2]

        # MLP trunk: Linear + ReLU, (num_hidden_layers) x [Linear + ReLU], Linear head.
        h = x_ref[...].astype(jnp.float32)
        h = jnp.maximum(
            jnp.dot(h, w_in_ref[...], preferred_element_type=jnp.float32)
            + b_in_ref[...], 0.0)
        for li in range(num_hidden_layers):
            h = jnp.maximum(
                jnp.dot(h, w_hid_ref[li], preferred_element_type=jnp.float32)
                + b_hid_ref[li], 0.0)
        mu_logstd = (jnp.dot(h, w_out_ref[...], preferred_element_type=jnp.float32)
                     + b_out_ref[...])

        # chunk(2, dim=1), clamp, exp
        mu = mu_logstd[:, :action_dim]
        logstd = jnp.clip(mu_logstd[:, action_dim:2 * action_dim], -20.0, 2.0)
        std = jnp.exp(logstd)

        # reparameterized sample + tanh transform
        eps = eps_ref[...].astype(jnp.float32)
        z = mu + std * eps
        action = jnp.tanh(z)
        mean = jnp.tanh(mu)

        # lane-packed output slab: [action | mean | (logprob)] -> one DMA stream
        out_ref[:, :action_dim] = action.astype(out_ref.dtype)
        out_ref[:, action_dim:2 * action_dim] = mean.astype(out_ref.dtype)

        if with_logprob:
            # log_prob of TransformedDistribution(Normal, TanhTransform) at `action`
            #   base.log_prob(z) = -0.5*eps^2 - logstd - 0.5*log(2*pi)
            #   log|d tanh/dz|   = 2*(log 2 - z - softplus(-2z))
            base_logp = -0.5 * eps * eps - logstd - _HALF_LOG_2PI
            log_det = 2.0 * (_LOG_2 - z - _softplus(-2.0 * z))
            logprob = jnp.sum(base_logp - log_det, axis=-1, keepdims=True)
            out_ref[:, 2 * action_dim:] = logprob.astype(out_ref.dtype)

    return kernel


def _plan_tiling(batch, state_dim, action_dim, hidden, num_hidden_layers,
                 out_width, x_itemsize, eps_itemsize, out_itemsize, block_batch):
    """Pick a batch tile + vmem limit from a conservative (v7x-safe) VMEM budget."""
    L = num_hidden_layers
    param_bytes = 4 * (state_dim * hidden + hidden
                       + L * hidden * hidden + L * hidden
                       + hidden * 2 * action_dim + 2 * action_dim)
    # double-buffered streaming tiles + generous headroom for f32 intermediates
    per_row = (2 * (state_dim * x_itemsize + action_dim * eps_itemsize
                    + out_width * out_itemsize)
               + 8 * 4 * max(hidden, 2 * action_dim))
    budget = max(_VMEM_BUDGET - param_bytes, 1 << 20)
    tb_cap = max(8, (budget // per_row) // 8 * 8)
    tb = min(block_batch, _round_up(batch, 8), tb_cap)
    tb = max(8, (tb // 8) * 8)
    padded = _round_up(batch, tb)
    vmem_limit = int(min(max(param_bytes + per_row * tb + (4 << 20), 16 << 20),
                         64 << 20))
    return tb, padded, vmem_limit


def init_policy_params(key, state_dim, action_dim, num_hidden_layers, hidden_size):
    """Init mimicking PyTorch nn.Linear default (uniform +-1/sqrt(fan_in)).

    Weights stored as [in_features, out_features]; hidden layers stacked:
      w_in (S,H), b_in (1,H), w_hid (L,H,H), b_hid (L,1,H), w_out (H,2A), b_out (1,2A)."""

    def linear(k, fan_in, fan_out):
        kw, kb = jax.random.split(k)
        bound = 1.0 / math.sqrt(fan_in)
        w = jax.random.uniform(kw, (fan_in, fan_out), jnp.float32, -bound, bound)
        b = jax.random.uniform(kb, (1, fan_out), jnp.float32, -bound, bound)
        return w, b

    keys = jax.random.split(key, num_hidden_layers + 2)
    w_in, b_in = linear(keys[0], state_dim, hidden_size)
    if num_hidden_layers > 0:
        ws, bs = [], []
        for li in range(num_hidden_layers):
            w, b = linear(keys[1 + li], hidden_size, hidden_size)
            ws.append(w)
            bs.append(b)
        w_hid = jnp.stack(ws, axis=0)          # (L, H, H)
        b_hid = jnp.stack(bs, axis=0)          # (L, 1, H)
    else:
        w_hid, b_hid = None, None
    w_out, b_out = linear(keys[-1], hidden_size, 2 * action_dim)
    return (w_in, b_in, w_hid, b_hid, w_out, b_out)


def policy_forward(x, eps, params, action_dim, get_logprob=False, *,
                   block_batch=512, out_dtype=jnp.float32):
    """Run the Policy forward pass. Returns (action, logprob_or_None, mean)."""
    w_in, b_in, w_hid, b_hid, w_out, b_out = params
    batch, state_dim = x.shape
    hidden = w_in.shape[1]
    num_hidden_layers = 0 if w_hid is None else int(w_hid.shape[0])
    out_width = 2 * action_dim + (1 if get_logprob else 0)

    tb, padded, vmem_limit = _plan_tiling(
        batch, state_dim, action_dim, hidden, num_hidden_layers, out_width,
        jnp.dtype(x.dtype).itemsize, jnp.dtype(eps.dtype).itemsize,
        jnp.dtype(out_dtype).itemsize, block_batch)

    if padded != batch:
        x = jnp.pad(x, ((0, padded - batch), (0, 0)))
        eps = jnp.pad(eps, ((0, padded - batch), (0, 0)))

    grid = (padded // tb,)

    def tiled(feat):
        return pl.BlockSpec((tb, feat), lambda i: (i, 0))

    def resident(arr):
        zeros = (0,) * arr.ndim
        return pl.BlockSpec(arr.shape, lambda i, _z=zeros: _z)

    param_list = [w_in, b_in]
    if num_hidden_layers > 0:
        param_list += [w_hid, b_hid]
    param_list += [w_out, b_out]

    in_specs = ([tiled(state_dim), tiled(action_dim)]
                + [resident(p) for p in param_list])

    kernel = _make_policy_kernel(num_hidden_layers, action_dim, get_logprob)

    packed = pl.pallas_call(
        kernel,
        out_shape=jax.ShapeDtypeStruct((padded, out_width), out_dtype),
        grid=grid,
        in_specs=in_specs,
        out_specs=tiled(out_width),
        compiler_params=pltpu.CompilerParams(
            dimension_semantics=("parallel",),   # split batch tiles across v7x's 2 TCs
            vmem_limit_bytes=vmem_limit,
        ),
    )(x, eps, *param_list)

    packed = packed[:batch]
    action = packed[:, :action_dim]
    mean = packed[:, action_dim:2 * action_dim]
    logprob = packed[:, 2 * action_dim:] if get_logprob else None
    return action, logprob, mean


def _reference_forward(x, eps, params, action_dim):
    """Plain-JAX reference (f32)."""
    w_in, b_in, w_hid, b_hid, w_out, b_out = params
    h = jnp.maximum(x @ w_in + b_in, 0.0)
    if w_hid is not None:
        for li in range(w_hid.shape[0]):
            h = jnp.maximum(h @ w_hid[li] + b_hid[li], 0.0)
    mu_logstd = h @ w_out + b_out
    mu = mu_logstd[:, :action_dim]
    logstd = jnp.clip(mu_logstd[:, action_dim:], -20.0, 2.0)
    std = jnp.exp(logstd)
    z = mu + std * eps
    action = jnp.tanh(z)
    base_logp = -0.5 * eps * eps - logstd - 0.5 * math.log(2.0 * math.pi)
    log_det = 2.0 * (math.log(2.0) - z - jax.nn.softplus(-2.0 * z))
    logprob = jnp.sum(base_logp - log_det, axis=-1, keepdims=True)
    return action, logprob, jnp.tanh(mu)


if __name__ == "__main__":
    # small shapes consistent with the module
    batch = 50            # deliberately not a multiple of the tile -> exercises padding
    state_dim = 16
    action_dim = 4
    num_hidden_layers = 2
    hidden_size = 32

    key = jax.random.PRNGKey(0)
    key, kx, keps, kparams = jax.random.split(key, 4)

    x = jax.random.normal(kx, (batch, state_dim), jnp.float32)
    eps = jax.random.normal(keps, (batch, action_dim), jnp.float32)   # rsample noise
    params = init_policy_params(kparams, state_dim, action_dim,
                                num_hidden_layers, hidden_size)
    ra, rl, rm = _reference_forward(x, eps, params, action_dim)

    # 1) logprob path, small tile -> multi-step batch grid (4 tiles) + padding
    action, logprob, mean = policy_forward(x, eps, params, action_dim,
                                           get_logprob=True, block_batch=16)
    jax.block_until_ready((action, logprob, mean))
    assert action.shape == (batch, action_dim)
    assert logprob.shape == (batch, 1)
    assert mean.shape == (batch, action_dim)
    assert jnp.allclose(action, ra, atol=2e-5), "action mismatch"
    assert jnp.allclose(logprob, rl, atol=2e-4), "logprob mismatch"
    assert jnp.allclose(mean, rm, atol=2e-5), "mean mismatch"

    # 2) no-logprob (actor/inference) path: slimmer kernel variant, logprob is None
    a2, l2, m2 = policy_forward(x, eps, params, action_dim, get_logprob=False)
    jax.block_until_ready((a2, m2))
    assert l2 is None
    assert jnp.allclose(a2, ra, atol=2e-5), "action mismatch (no-logprob path)"
    assert jnp.allclose(m2, rm, atol=2e-5), "mean mismatch (no-logprob path)"

    # 3) bf16 activations at the pallas_call boundary (HBM-traffic saver on v6e/v7x);
    #    the kernel upcasts to f32, so a reference fed the same bf16-rounded inputs matches.
    xb = x.astype(jnp.bfloat16)
    eb = eps.astype(jnp.bfloat16)
    a3, l3, m3 = policy_forward(xb, eb, params, action_dim, get_logprob=True)
    jax.block_until_ready((a3, l3, m3))
    ra3, rl3, rm3 = _reference_forward(xb.astype(jnp.float32),
                                       eb.astype(jnp.float32), params, action_dim)
    assert jnp.allclose(a3, ra3, atol=2e-5), "action mismatch (bf16 inputs)"
    assert jnp.allclose(l3, rl3, atol=2e-4), "logprob mismatch (bf16 inputs)"
    assert jnp.allclose(m3, rm3, atol=2e-5), "mean mismatch (bf16 inputs)"

    print("KERNEL_OK")
</pallas_src>

<mosaic_0001>
module attributes {stable_mosaic.version = 11 : i64} {
  func.func @kernel(%arg0: i32, %arg1: memref<16x16xf32, #tpu.memory_space<vmem>>, %arg2: memref<16x4xf32, #tpu.memory_space<vmem>>, %arg3: memref<16x32xf32, #tpu.memory_space<vmem>>, %arg4: memref<1x32xf32, #tpu.memory_space<vmem>>, %arg5: memref<2x32x32xf32, #tpu.memory_space<vmem>>, %arg6: memref<2x1x32xf32, #tpu.memory_space<vmem>>, %arg7: memref<32x8xf32, #tpu.memory_space<vmem>>, %arg8: memref<1x8xf32, #tpu.memory_space<vmem>>, %arg9: memref<16x9xf32, #tpu.memory_space<vmem>>) attributes {dimension_semantics = [#tpu.dimension_semantics<parallel>], iteration_bounds = array<i64: 4>, scalar_prefetch = 0 : i64, scratch_operands = 0 : i64, tpu.core_type = #tpu.core_type<tc>, window_params = [{transform_indices = @transform_0, window_bounds = array<i64: 16, 16>}, {transform_indices = @transform_1, window_bounds = array<i64: 16, 4>}, {pipeline_mode = #tpu.pipeline_mode<synchronous>, transform_indices = @transform_2, window_bounds = array<i64: 16, 32>}, {pipeline_mode = #tpu.pipeline_mode<synchronous>, transform_indices = @transform_3, window_bounds = array<i64: 1, 32>}, {pipeline_mode = #tpu.pipeline_mode<synchronous>, transform_indices = @transform_4, window_bounds = array<i64: 2, 32, 32>}, {pipeline_mode = #tpu.pipeline_mode<synchronous>, transform_indices = @transform_5, window_bounds = array<i64: 2, 1, 32>}, {pipeline_mode = #tpu.pipeline_mode<synchronous>, transform_indices = @transform_6, window_bounds = array<i64: 32, 8>}, {pipeline_mode = #tpu.pipeline_mode<synchronous>, transform_indices = @transform_7, window_bounds = array<i64: 1, 8>}, {transform_indices = @transform_8, window_bounds = array<i64: 16, 9>}]} {
    %c0 = arith.constant 0 : index
    %c0_0 = arith.constant 0 : index
    %0 = vector.load %arg1[%c0, %c0_0] : memref<16x16xf32, #tpu.memory_space<vmem>>, vector<16x16xf32>
    %c0_1 = arith.constant 0 : index
    %c0_2 = arith.constant 0 : index
    %1 = vector.load %arg3[%c0_1, %c0_2] : memref<16x32xf32, #tpu.memory_space<vmem>>, vector<16x32xf32>
    %cst = arith.constant dense<0.000000e+00> : vector<16x32xf32>
    %2 = tpu.matmul %0, %1, %cst {dimension_numbers = #tpu.dot_dimension_numbers<[1], [0], [0], [1], [0, 0, 1, 1], [], []>} : vector<16x16xf32>, vector<16x32xf32>, vector<16x32xf32> -> vector<16x32xf32>
    %c0_3 = arith.constant 0 : index
    %c0_4 = arith.constant 0 : index
    %3 = vector.load %arg4[%c0_3, %c0_4] : memref<1x32xf32, #tpu.memory_space<vmem>>, vector<1x32xf32>
    %4 = vector.broadcast %3 : vector<1x32xf32> to vector<16x32xf32>
    %5 = arith.addf %2, %4 : vector<16x32xf32>
    %cst_5 = arith.constant 0.000000e+00 : f32
    %6 = vector.broadcast %cst_5 : f32 to vector<16x32xf32>
    %7 = arith.maximumf %5, %6 : vector<16x32xf32>
    %c0_6 = arith.constant 0 : index
    %c0_7 = arith.constant 0 : index
    %c0_8 = arith.constant 0 : index
    %8 = vector.load %arg5[%c0_6, %c0_7, %c0_8] : memref<2x32x32xf32, #tpu.memory_space<vmem>>, vector<1x32x32xf32>
    %9 = vector.shape_cast %8 : vector<1x32x32xf32> to vector<32x32xf32>
    %cst_9 = arith.constant dense<0.000000e+00> : vector<16x32xf32>
    %10 = tpu.matmul %7, %9, %cst_9 {dimension_numbers = #tpu.dot_dimension_numbers<[1], [0], [0], [1], [0, 0, 1, 1], [], []>} : vector<16x32xf32>, vector<32x32xf32>, vector<16x32xf32> -> vector<16x32xf32>
    %c0_10 = arith.constant 0 : index
    %c0_11 = arith.constant 0 : index
    %c0_12 = arith.constant 0 : index
    %11 = vector.load %arg6[%c0_10, %c0_11, %c0_12] : memref<2x1x32xf32, #tpu.memory_space<vmem>>, vector<1x1x32xf32>
    %12 = vector.shape_cast %11 : vector<1x1x32xf32> to vector<1x32xf32>
    %13 = vector.broadcast %12 : vector<1x32xf32> to vector<16x32xf32>
    %14 = arith.addf %10, %13 : vector<16x32xf32>
    %cst_13 = arith.constant 0.000000e+00 : f32
    %15 = vector.broadcast %cst_13 : f32 to vector<16x32xf32>
    %16 = arith.maximumf %14, %15 : vector<16x32xf32>
    %c1 = arith.constant 1 : index
    %c0_14 = arith.constant 0 : index
    %c0_15 = arith.constant 0 : index
    %17 = vector.load %arg5[%c1, %c0_14, %c0_15] : memref<2x32x32xf32, #tpu.memory_space<vmem>>, vector<1x32x32xf32>
    %18 = vector.shape_cast %17 : vector<1x32x32xf32> to vector<32x32xf32>
    %cst_16 = arith.constant dense<0.000000e+00> : vector<16x32xf32>
    %19 = tpu.matmul %16, %18, %cst_16 {dimension_numbers = #tpu.dot_dimension_numbers<[1], [0], [0], [1], [0, 0, 1, 1], [], []>} : vector<16x32xf32>, vector<32x32xf32>, vector<16x32xf32> -> vector<16x32xf32>
    %c1_17 = arith.constant 1 : index
    %c0_18 = arith.constant 0 : index
    %c0_19 = arith.constant 0 : index
    %20 = vector.load %arg6[%c1_17, %c0_18, %c0_19] : memref<2x1x32xf32, #tpu.memory_space<vmem>>, vector<1x1x32xf32>
    %21 = vector.shape_cast %20 : vector<1x1x32xf32> to vector<1x32xf32>
    %22 = vector.broadcast %21 : vector<1x32xf32> to vector<16x32xf32>
    %23 = arith.addf %19, %22 : vector<16x32xf32>
    %cst_20 = arith.constant 0.000000e+00 : f32
    %24 = vector.broadcast %cst_20 : f32 to vector<16x32xf32>
    %25 = arith.maximumf %23, %24 : vector<16x32xf32>
    %c0_21 = arith.constant 0 : index
    %c0_22 = arith.constant 0 : index
    %26 = vector.load %arg7[%c0_21, %c0_22] : memref<32x8xf32, #tpu.memory_space<vmem>>, vector<32x8xf32>
    %cst_23 = arith.constant dense<0.000000e+00> : vector<16x8xf32>
    %27 = tpu.matmul %25, %26, %cst_23 {dimension_numbers = #tpu.dot_dimension_numbers<[1], [0], [0], [1], [0, 0, 1, 1], [], []>} : vector<16x32xf32>, vector<32x8xf32>, vector<16x8xf32> -> vector<16x8xf32>
    %c0_24 = arith.constant 0 : index
    %c0_25 = arith.constant 0 : index
    %28 = vector.load %arg8[%c0_24, %c0_25] : memref<1x8xf32, #tpu.memory_space<vmem>>, vector<1x8xf32>
    %29 = vector.broadcast %28 : vector<1x8xf32> to vector<16x8xf32>
    %30 = arith.addf %27, %29 : vector<16x8xf32>
    %31 = vector.extract_strided_slice %30 {offsets = [0, 0], sizes = [16, 4], strides = [1, 1]} : vector<16x8xf32> to vector<16x4xf32>
    %32 = vector.extract_strided_slice %30 {offsets = [0, 4], sizes = [16, 4], strides = [1, 1]} : vector<16x8xf32> to vector<16x4xf32>
    %cst_26 = arith.constant -2.000000e+01 : f32
    %cst_27 = arith.constant 2.000000e+00 : f32
    %33 = vector.broadcast %cst_26 : f32 to vector<16x4xf32>
    %34 = arith.maximumf %33, %32 : vector<16x4xf32>
    %35 = vector.broadcast %cst_27 : f32 to vector<16x4xf32>
    %36 = arith.minimumf %35, %34 : vector<16x4xf32>
    %37 = math.exp %36 : vector<16x4xf32>
    %c0_28 = arith.constant 0 : index
    %c0_29 = arith.constant 0 : index
    %38 = vector.load %arg2[%c0_28, %c0_29] : memref<16x4xf32, #tpu.memory_space<vmem>>, vector<16x4xf32>
    %39 = arith.mulf %37, %38 : vector<16x4xf32>
    %40 = arith.addf %31, %39 : vector<16x4xf32>
    %41 = math.tanh %40 : vector<16x4xf32>
    %42 = math.tanh %31 : vector<16x4xf32>
    %c0_30 = arith.constant 0 : index
    %c0_31 = arith.constant 0 : index
    %43 = vector.load %arg9[%c0_30, %c0_31] : memref<16x9xf32, #tpu.memory_space<vmem>>, vector<16x4xf32>
    tpu.vector_store %arg9[%c0_30, %c0_31], %41 {strides = array<i32>} : memref<16x9xf32, #tpu.memory_space<vmem>>, vector<16x4xf32>,
    %c0_32 = arith.constant 0 : index
    %c4 = arith.constant 4 : index
    %44 = vector.load %arg9[%c0_32, %c4] : memref<16x9xf32, #tpu.memory_space<vmem>>, vector<16x4xf32>
    tpu.vector_store %arg9[%c0_32, %c4], %42 {strides = array<i32>} : memref<16x9xf32, #tpu.memory_space<vmem>>, vector<16x4xf32>,
    %cst_33 = arith.constant -5.000000e-01 : f32
    %45 = vector.broadcast %cst_33 : f32 to vector<16x4xf32>
    %46 = arith.mulf %45, %38 : vector<16x4xf32>
    %47 = arith.mulf %46, %38 : vector<16x4xf32>
    %48 = arith.subf %47, %36 : vector<16x4xf32>
    %cst_34 = arith.constant 0.918938517 : f32
    %49 = vector.broadcast %cst_34 : f32 to vector<16x4xf32>
    %50 = arith.subf %48, %49 : vector<16x4xf32>
    %cst_35 = arith.constant 0.693147182 : f32
    %51 = vector.broadcast %cst_35 : f32 to vector<16x4xf32>
    %52 = arith.subf %51, %40 : vector<16x4xf32>
    %cst_36 = arith.constant -2.000000e+00 : f32
    %53 = vector.broadcast %cst_36 : f32 to vector<16x4xf32>
    %54 = arith.mulf %53, %40 : vector<16x4xf32>
    %cst_37 = arith.constant 0.000000e+00 : f32
    %55 = vector.broadcast %cst_37 : f32 to vector<16x4xf32>
    %56 = arith.maximumf %54, %55 : vector<16x4xf32>
    %57 = math.absf %54 : vector<16x4xf32>
    %cst_38 = arith.constant 0.000000e+00 : f32
    %58 = vector.broadcast %cst_38 : f32 to vector<16x4xf32>
    %59 = arith.subf %58, %57 : vector<16x4xf32>
    %60 = math.exp %59 : vector<16x4xf32>
    %61 = math.log1p %60 : vector<16x4xf32>
    %62 = arith.addf %56, %61 : vector<16x4xf32>
    %63 = arith.subf %52, %62 : vector<16x4xf32>
    %cst_39 = arith.constant 2.000000e+00 : f32
    %64 = vector.broadcast %cst_39 : f32 to vector<16x4xf32>
    %65 = arith.mulf %64, %63 : vector<16x4xf32>
    %66 = arith.subf %50, %65 : vector<16x4xf32>
    %cst_40 = arith.constant dense<0.000000e+00> : vector<16xf32>
    %67 = vector.multi_reduction <add>, %66, %cst_40 [1] : vector<16x4xf32> to vector<16xf32>
    %68 = vector.shape_cast %67 : vector<16xf32> to vector<16x1xf32>
    %c0_41 = arith.constant 0 : index
    %c8 = arith.constant 8 : index
    %69 = vector.load %arg9[%c0_41, %c8] : memref<16x9xf32, #tpu.memory_space<vmem>>, vector<16x1xf32>
    tpu.vector_store %arg9[%c0_41, %c8], %68 {strides = array<i32>} : memref<16x9xf32, #tpu.memory_space<vmem>>, vector<16x1xf32>,
    return
  }
  func.func @transform_0(%arg0: i32) -> (i32, i32) {
    %c0_i32 = arith.constant 0 : i32
    %c0_i32_0 = arith.constant 0 : i32
    return %arg0, %c0_i32 : i32, i32
  }
  func.func @transform_1(%arg0: i32) -> (i32, i32) {
    %c0_i32 = arith.constant 0 : i32
    %c0_i32_0 = arith.constant 0 : i32
    return %arg0, %c0_i32 : i32, i32
  }
  func.func @transform_2(%arg0: i32) -> (i32, i32) {
    %c0_i32 = arith.constant 0 : i32
    %c0_i32_0 = arith.constant 0 : i32
    %c0_i32_1 = arith.constant 0 : i32
    return %c0_i32, %c0_i32_0 : i32, i32
  }
  func.func @transform_3(%arg0: i32) -> (i32, i32) {
    %c0_i32 = arith.constant 0 : i32
    %c0_i32_0 = arith.constant 0 : i32
    %c0_i32_1 = arith.constant 0 : i32
    return %c0_i32, %c0_i32_0 : i32, i32
  }
  func.func @transform_4(%arg0: i32) -> (i32, i32, i32) {
    %c0_i32 = arith.constant 0 : i32
    %c0_i32_0 = arith.constant 0 : i32
    %c0_i32_1 = arith.constant 0 : i32
    %c0_i32_2 = arith.constant 0 : i32
    return %c0_i32, %c0_i32_0, %c0_i32_1 : i32, i32, i32
  }
  func.func @transform_5(%arg0: i32) -> (i32, i32, i32) {
    %c0_i32 = arith.constant 0 : i32
    %c0_i32_0 = arith.constant 0 : i32
    %c0_i32_1 = arith.constant 0 : i32
    %c0_i32_2 = arith.constant 0 : i32
    return %c0_i32, %c0_i32_0, %c0_i32_1 : i32, i32, i32
  }
  func.func @transform_6(%arg0: i32) -> (i32, i32) {
    %c0_i32 = arith.constant 0 : i32
    %c0_i32_0 = arith.constant 0 : i32
    %c0_i32_1 = arith.constant 0 : i32
    return %c0_i32, %c0_i32_0 : i32, i32
  }
  func.func @transform_7(%arg0: i32) -> (i32, i32) {
    %c0_i32 = arith.constant 0 : i32
    %c0_i32_0 = arith.constant 0 : i32
    %c0_i32_1 = arith.constant 0 : i32
    return %c0_i32, %c0_i32_0 : i32, i32
  }
  func.func @transform_8(%arg0: i32) -> (i32, i32) {
    %c0_i32 = arith.constant 0 : i32
    %c0_i32_0 = arith.constant 0 : i32
    return %arg0, %c0_i32 : i32, i32
  }
}

</mosaic_0001>

<bundles_post_ra>
// kernel: tpu_custom_call.1
= control target key start
LH: loop header
LB: loop body
LE: loop exit
PB: predicated region body
PF: predicated region fallthrough
CT: control target
= control target key end

     0   :  { %s1097_s27 = smov 0   ;;  %s1218_s0 = inlined_call_operand.vmem [shape: f32[64,16], index: 0, kind: input, shape index: {}]   ;;  %s1219_s1 = inlined_call_operand.vmem [shape: f32[64,4], index: 1, kind: input, shape index: {}]   ;;  %s1220_s2 = inlined_call_operand.vmem [shape: f32[16,32], index: 2, kind: input, shape index: {}]   ;;  %s1221_s3 = inlined_call_operand.vmem [shape: f32[1,32], index: 3, kind: input, shape index: {}]   ;;  %s1222_s4 = inlined_call_operand.vmem [shape: f32[2,32,32], index: 4, kind: input, shape index: {}]   ;;  %s1223_s5 = inlined_call_operand.vmem [shape: f32[2,1,32], index: 5, kind: input, shape index: {}]   ;;  %s1224_s6 = inlined_call_operand.vmem [shape: f32[32,8], index: 6, kind: input, shape index: {}]   ;;  %s1225_s7 = inlined_call_operand.vmem [shape: f32[1,8], index: 7, kind: input, shape index: {}]   ;;  %s1226_s8 = inlined_call_operand.vmem [shape: f32[64,9], index: 8, kind: output, shape index: {}]  }
   0x1 LB: > { %s890_s28 = sadd.s32 4294967295, %s1048_s27   ;;  %p894_p0 = scmp.ge.s32.totalorder %s1048_s27, 1  ;;  %s1048_s27 = sphi %s1097_s27, %s18_s27  }
   0x2   : > { %p274_p1 = scmp.lt.s32.totalorder %s1048_s27, 5 }
   0x4   : > { %p275_p2 = pnand %p894_p0, %p274_p1 }
   0x5   : > { %v333_v0 = vld [vmem:[%s1220_s2] sm:$0xff] (!%p275_p2)  ;;  %v334_v1 = vld [vmem:[%s1220_s2 + $0x8] sm:$0xff] (!%p275_p2)  ;;  %s895_s11 = sshll.u32 (!%p275_p2), %s890_s28, 1  ;;  %vm342_vm0 = vcmask (!%p275_p2), 130048   ;;  %v428_v8 = vld [vmem:[%s1222_s4 + $0x10] sm:$0xff] (!%p275_p2)  ;;  %vm437_vm1 = vcmask (!%p275_p2), 261120  }
   0x6   : > { %278 = sbr.rel (%p275_p2) target bundleno = 1219 (0x4c3), region = 52  ;;  %v426_v2 = vld [vmem:[%s1222_s4] sm:$0xff] (!%p275_p2)  ;;  %v984_v3 = vpack.c.bf16 (!%p275_p2), %v334_v1, %v333_v0  ;;  %p314_p3 = scmp.lt.s32.totalorder (!%p275_p2), %s895_s11, 7  ;;  %v427_v4 = vld [vmem:[%s1222_s4 + $0x8] sm:$0xff] (!%p275_p2)  ;;  %v429_v9 = vld [vmem:[%s1222_s4 + $0x18] sm:$0xff] (!%p275_p2)  ;;  %vm743_vm2 = vcmask (!%p275_p2), 31744  }
   0x7   : > { %v988_v5 = vpack.c.bf16 (!%p275_p2), %v427_v4, %v426_v2  ;;  %v992_v10 = vpack.c.bf16 (!%p275_p2), %v429_v9, %v428_v8  ;;  %v907_v11 = vld [vmem:[%s1222_s4 + $0x20] sm:$0xff] (!%p275_p2)  ;;  %v908_v12 = vld [vmem:[%s1222_s4 + $0x28] sm:$0xff] (!%p275_p2)  ;;  %v909_v21 = vld [vmem:[%s1222_s4 + $0x30] sm:$0xff] (!%p275_p2)  ;;  %s1050_s28 = smov (!%p275_p2), 4   ;;  %vm754_vm5 = vcmask (!%p275_p2), 64544   ;;  %vm819_vm6 = vcmask (!%p275_p2), 72768  }
   0x8   : > { %985 = vmatprep.subr.bf16.mxu0 (!%p275_p2), %v984_v3  ;;  %v996_v13 = vpack.c.bf16 (!%p275_p2), %v908_v12, %v907_v11  ;;  %v901_v14 = vld [vmem:[%s1221_s3] ss:$0 sm:$0xff] (!%p275_p2)  ;;  %v910_v22 = vld [vmem:[%s1222_s4 + $0x38] sm:$0xff] (!%p275_p2)  ;;  %v618_v25 = vld [vmem:[%s1224_s6 + $0x8] sm:$0xff] (!%p275_p2) }
   0x9   : > { %987 = vmatpush3.bf16.msra.mxu0 (!%p275_p2), %v984_v3  ;;  %989 = vmatprep.subr.bf16.mxu1 (!%p275_p2), %v988_v5  ;;  %v1000_v23 = vpack.c.bf16 (!%p275_p2), %v910_v22, %v909_v21  ;;  %v617_v24 = vld [vmem:[%s1224_s6] sm:$0xff] (!%p275_p2)  ;;  %v619_v34 = vld [vmem:[%s1224_s6 + $0x10] sm:$0xff] (!%p275_p2)  ;;  %v620_v35 = vld [vmem:[%s1224_s6 + $0x18] sm:$0xff] (!%p275_p2) }
   0xa   : > { %991 = vmatpush3.bf16.msra.mxu1 (!%p275_p2), %v988_v5  ;;  %997 = vmatprep.subr.bf16.mxu0 (!%p275_p2), %v996_v13  ;;  %v1004_v26 = vpack.c.bf16 (!%p275_p2), %v618_v25, %v617_v24  ;;  %v904_v27 = vld [vmem:[%s1223_s5] ss:$0 sm:$0xff] (!%p275_p2)  ;;  %v1008_v36 = vpack.c.bf16 (!%p275_p2), %v620_v35, %v619_v34  ;;  %v912_v39 = vld [vmem:[%s1223_s5 + $0x1] ss:$0 sm:$0xff] (!%p275_p2) }
   0xb   : > { %993 = vmatprep.subr.bf16.mxu1 (!%p275_p2), %v992_v10  ;;  %v915_v46 = vld [vmem:[%s1225_s7] ss:$0 sm:$0xff] (!%p275_p2) }
   0xd   : > { %s1228_s11 = smov (!%p314_p3, %s895_s11), 7 }
   0xe   : > { %s1117_s16 = sshll.u32 %s1228_s11, 3  ;;  %995 = vmatpush3.bf16.msra.mxu1 %v992_v10  ;;  %s1051_s11 = smov 124  }
   0xf   : > { %s317_s19 = scalar_lea.vmem %s1218_s0, %s1117_s16  ;;  %1005 = vmatprep.subr.bf16.mxu1 %v1004_v26  ;;  %s323_s26 = scalar_lea.vmem %s1219_s1, %s1117_s16 }
  0x10   : > { %v331_v6 = vld [vmem:[%s317_s19] sm:$0xff]  ;;  %v332_v7 = vld [vmem:[%s317_s19 + $0x8] sm:$0xff]  ;;  %s1195_s14 = scalar_lea.vmem %s1226_s8, %s1117_s16 }
  0x11   : > { %948 = vmatprep.mubr.msk.f32.mxu0 %vm342_vm0, %v331_v6  ;;  %v1167_v37 = vld [vmem:[%s323_s26] sm:$0xff]  ;;  %v1171_v38 = vld [vmem:[%s323_s26 + $0x8] sm:$0xff] }
  0x12   : > { %949 = vmatmul.mubr.msk.f32.vlgmr.msra.gmra.mrb[0].mxu0 %vm342_vm0, %v332_v7  ;;  %721 = vrot.lane.b32.xlu0 %v1167_v37, %s1050_s28  ;;  %v758_v24 = vmul.f32 -0.5, %v1171_v38 }
  0x13   : > { %999 = vmatpush3.bf16.msra.mxu0 %v996_v13 }
  0x14   : > { %1001 = vmatprep.subr.bf16.mxu0 %v1000_v23  ;;  %v760_v35 = vmul.f32 %v758_v24, %v1171_v38 }
  0x16   : > { %723 = vrot.lane.b32.xlu0 %v1171_v38, %s1050_s28 }
  0x17   : > { %1003 = vmatpush3.bf16.msra.mxu0 %v1000_v23 }
  0x84   : > { %v722_v57 = vpop.permute.xlu0 %721 }
  0x88   : > { %v724_v61 = vpop.permute.xlu0 %723 }
  0xe5   : > { %v950_v15 = vpop.f32.mrb[0].mxu0 }
  0xe6   : > { %v421_v16 = vadd.f32 %v950_v15, %v901_v14  ;;  %v415_v17 = vpop.f32.mrb[1].mxu0 }
  0xe7   : > { %v416_v18 = vadd.f32 %v901_v14, %v415_v17 }
  0xe8   : > { %v425_v20 = vmax.f32 %v421_v16, 0.0 }
  0xe9   : > { %v424_v19 = vmax.f32 %v416_v18, 0.0  ;;  %v757_v18 = vmul.f32 -0.5, %v1167_v37 }
  0xeb   : > { %959 = vmatprep.mubr.msk.f32.mxu1 %vm437_vm1, %v424_v19  ;;  %v759_v22 = vmul.f32 %v757_v18, %v1167_v37 }
  0xec   : > { %960 = vmatmul.mubr.msk.f32.vlgmr.msra.gmra.mrb[0].mxu1 %vm437_vm1, %v425_v20 }
  0xed   : > { %1007 = vmatpush3.bf16.msra.mxu1 %v1004_v26 }
  0xee   : > { %1009 = vmatprep.subr.bf16.mxu1 %v1008_v36 }
  0xf1   : > { %1011 = vmatpush3.bf16.msra.mxu1 %v1008_v36 }
 0x1bf   : > { %v961_v28 = vpop.f32.mrb[0].mxu1 }
 0x1c0   : > { %v516_v29 = vadd.f32 %v961_v28, %v904_v27  ;;  %v510_v30 = vpop.f32.mrb[1].mxu1 }
 0x1c1   : > { %v511_v31 = vadd.f32 %v904_v27, %v510_v30 }
 0x1c2   : > { %v520_v33 = vmax.f32 %v516_v29, 0.0 }
 0x1c3   : > { %v519_v32 = vmax.f32 %v511_v31, 0.0 }
 0x1c5   : > { %970 = vmatprep.mubr.msk.f32.mxu0 %vm437_vm1, %v519_v32 }
 0x1c6   : > { %971 = vmatmul.mubr.msk.f32.vlgmr.msra.gmra.mrb[2].mxu0 %vm437_vm1, %v520_v33 }
 0x299   : > { %v972_v40 = vpop.f32.mrb[2].mxu0 }
 0x29a   : > { %v612_v41 = vadd.f32 %v972_v40, %v912_v39  ;;  %v606_v42 = vpop.f32.mrb[3].mxu0 }
 0x29b   : > { %v607_v43 = vadd.f32 %v912_v39, %v606_v42 }
 0x29c   : > { %v616_v45 = vmax.f32 %v612_v41, 0.0 }
 0x29d   : > { %v615_v44 = vmax.f32 %v607_v43, 0.0 }
 0x29f   : > { %981 = vmatprep.mubr.msk.f32.mxu1 %vm437_vm1, %v615_v44 }
 0x2a0   : > { %982 = vmatmul.mubr.msk.f32.vlgmr.msra.gmra.mrb[2].mxu1 %vm437_vm1, %v616_v45 }
 0x373   : > { %v983_v47 = vpop.f32.mrb[2].mxu1 }
 0x374   : > { %v1183_v48 = vadd.f32 %v983_v47, %v915_v46  ;;  %v700_v49 = vpop.f32.mrb[3].mxu1 }
 0x375   : > { %v1185_v50 = vadd.f32 %v915_v46, %v700_v49 }
 0x376   : > { %v710_v51 = vmax.f32 %v1183_v48, -20.0 }
 0x377   : > { %v709_v52 = vmax.f32 %v1185_v50, -20.0 }
 0x378   : > { %v712_v53 = vmin.f32 %v710_v51, 2.0 }
 0x379   : > { %v711_v54 = vmin.f32 %v709_v52, 2.0 }
 0x37a   : > { %v715_v55 = vmul.f32 1.442695, %v712_v53 }
 0x37b   : > { %763 = vrot.lane.b32.xlu0 %v711_v54, %s1051_s11  ;;  %v713_v56 = vmul.f32 1.442695, %v711_v54 }
 0x37d   : > { %1022 = vpow2.f32 %v713_v56 }
 0x37e   : > { %1024 = vpow2.f32 %v715_v55 }
 0x387   : > { %v1023_v58 = vpop.eup %1022 }
 0x388   : > { %v727_v59 = vmul.f32 %v1023_v58, %v722_v57  ;;  %v1025_v60 = vpop.eup %1024 }
 0x389   : > { %v728_v62 = vmul.f32 %v1025_v60, %v724_v61 }
 0x38a   : > { %731 = vrot.lane.b32.xlu1 %v727_v59, %s1051_s11 }
 0x38e   : > { %733 = vrot.lane.b32.xlu1 %v728_v62, %s1051_s11 }
 0x392   : > { %765 = vrot.lane.b32.xlu1 %v712_v53, %s1051_s11 }
 0x3ed   : > { %v764_v25 = vpop.permute.xlu0 %763 }
 0x3ee   : > { %v769_v31 = vsub.f32 %v759_v22, %v764_v25 }
 0x3f0   : > { %v918_v43 = vadd.f32 -0.9189385, %v769_v31 }
 0x3fc   : > { %v732_v63 = vpop.permute.xlu1 %731 }
 0x3fd   : > { %v737_v0 = vadd.f32 %v732_v63, %v1185_v50 }
 0x3ff   : > { %1026 = vtanh.f32 %v737_v0  ;;  %v775_v1 = vmul.f32 -2.0, %v737_v0  ;;  %v773_v34 = vsub.f32 0.6931472, %v737_v0 }
 0x400   : > { %v734_v2 = vpop.permute.xlu1 %733 }
 0x401   : > { %v779_v3 = vand.u32 2147483647, %v775_v1  ;;  %v738_v4 = vadd.f32 %v734_v2, %v1183_v48  ;;  %v777_v29 = vmax.f32 %v775_v1, 0.0 }
 0x403   : > { %v781_v5 = vsub.f32 0.0, %v779_v3  ;;  %1028 = vtanh.f32 %v738_v4  ;;  %v776_v6 = vmul.f32 -2.0, %v738_v4  ;;  %v774_v45 = vsub.f32 0.6931472, %v738_v4 }
 0x404   : > { %v766_v39 = vpop.permute.xlu1 %765 }
 0x405   : > { %v783_v7 = vmul.f32 1.442695, %v781_v5  ;;  %v780_v8 = vand.u32 2147483647, %v776_v6  ;;  %v778_v41 = vmax.f32 %v776_v6, 0.0  ;;  %v770_v46 = vsub.f32 %v760_v35, %v766_v39 }
 0x407   : > { %1030 = vpow2.f32 %v783_v7  ;;  %v782_v9 = vsub.f32 0.0, %v780_v8  ;;  %v919_v53 = vadd.f32 -0.9189385, %v770_v46 }
 0x409   : > { %v1027_v10 = vpop.eup %1026  ;;  %v785_v11 = vmul.f32 1.442695, %v782_v9 }
 0x40a   : > { %744 = vst.msk [vmem:[%s1195_s14] sm:$0xff] %vm743_vm2, %v1027_v10 }
 0x40b   : > { %1032 = vpow2.f32 %v785_v11 }
 0x40d   : > { %v1029_v12 = vpop.eup %1028 }
 0x40e   : > { %745 = vst.msk [vmem:[%s1195_s14 + $0x8] sm:$0xff] %vm743_vm2, %v1029_v12 }
 0x411   : > { %v1031_v13 = vpop.eup %1030 }
 0x412   : > { %v787_v14 = vadd.f32 1.0, %v1031_v13  ;;  %v790_v17 = vmul.f32 -0.5, %v1031_v13  ;;  %v793_v21 = vand.u32 2147483647, %v1031_v13 }
 0x414   : > { %1034 = vlog2.f32 %v787_v14  ;;  %v791_v19 = vadd.f32 1.0, %v790_v17  ;;  %vm794_vm3 = vcmp.lt.f32.partialorder %v793_v21, 0.0004427343 }
 0x415   : > { %v1033_v15 = vpop.eup %1032 }
 0x416   : > { %v796_v16 = vadd.f32 1.0, %v1033_v15  ;;  %v799_v20 = vmul.f32 -0.5, %v1033_v15  ;;  %v792_v27 = vmul.f32 %v1031_v13, %v791_v19  ;;  %v802_v30 = vand.u32 2147483647, %v1033_v15 }
 0x418   : > { %1036 = vlog2.f32 %v796_v16  ;;  %v800_v28 = vadd.f32 1.0, %v799_v20  ;;  %vm803_vm4 = vcmp.lt.f32.partialorder %v802_v30, 0.0004427343 }
 0x419   : > { %1038 = vtanh.f32 %v1183_v48 }
 0x41a   : > { %v801_v37 = vmul.f32 %v1033_v15, %v800_v28  ;;  %1040 = vtanh.f32 %v1185_v50 }
 0x41e   : > { %v1035_v23 = vpop.eup %1034 }
 0x41f   : > { %v789_v26 = vmul.f32 0.6931472, %v1035_v23 }
 0x421   : > { %v795_v32 = vsel %vm794_vm3, %v792_v27, %v789_v26 }
 0x422   : > { %v1037_v33 = vpop.eup %1036  ;;  %v805_v36 = vadd.f32 %v795_v32, %v777_v29 }
 0x423   : > { %v798_v40 = vmul.f32 0.6931472, %v1037_v33  ;;  %v1039_v57 = vpop.eup %1038 }
 0x424   : > { %v807_v42 = vsub.f32 %v773_v34, %v805_v36  ;;  %v1041_v58 = vpop.eup %1040 }
 0x425   : > { %v804_v44 = vsel %vm803_vm4, %v801_v37, %v798_v40 }
 0x426   : > { %v809_v47 = vmul.f32 2.0, %v807_v42  ;;  %v806_v49 = vadd.f32 %v804_v44, %v778_v41 }
 0x428   : > { %v811_v51 = vsub.f32 %v918_v43, %v809_v47  ;;  %v808_v52 = vsub.f32 %v774_v45, %v806_v49 }
 0x42a   : > { %v813_v54 = vsel %vm743_vm2, %v811_v51, 0.0  ;;  %v810_v38 = vmul.f32 2.0, %v808_v52 }
 0x42b   : > { %814 = vadd.xlane.f32.xlu0 %v813_v54 }
 0x42c   : > { %v812_v55 = vsub.f32 %v919_v53, %v810_v38 }
 0x42e   : > { %v816_v56 = vsel %vm743_vm2, %v812_v55, 0.0 }
 0x42f   : > { %817 = vadd.xlane.f32.xlu1 %v816_v56 }
 0x440   : > { %750 = vrot.lane.b32.xlu1 %v1039_v57, %s1050_s28 }
 0x441   : > { %748 = vrot.lane.b32.xlu0 %v1041_v58, %s1050_s28 }
 0x4b8   : > { %v815_v59 = vpop.xlane.xlu0 %814 }
 0x4bc   : > { %v749_v60 = vpop.permute.xlu0 %748  ;;  %v818_v61 = vpop.xlane.xlu1 %817 }
 0x4bd   : > { %755 = vst.msk [vmem:[%s1195_s14] sm:$0xff] %vm754_vm5, %v749_v60 }
 0x4be   : > { %820 = vst.msk [vmem:[%s1195_s14] sm:$0xff] %vm819_vm6, %v815_v59 }
 0x4c0   : > { %v751_v62 = vpop.permute.xlu1 %750 }
 0x4c1   : > { %756 = vst.msk [vmem:[%s1195_s14 + $0x8] sm:$0xff] %vm754_vm5, %v751_v62 }
 0x4c2   : > { %821 = vst.msk [vmem:[%s1195_s14 + $0x8] sm:$0xff] %vm819_vm6, %v818_v61 }
 0x4c3 PF: > { %s18_s27 = sadd.s32 1, %s1048_s27  }
 0x4c4   : > { %p15_p4 = scmp.ge.s32.totalorder %s18_s27, 6  }
 0x4c6   :  { %17 = sbr.rel (!%p15_p4) target bundleno = 1 (0x1), region = 87 }

</bundles_post_ra>
